<compile_context>
chip_gen: v5e
topology: v5e:2x2
jax: 0.10.0
libtpu: 0.0.40
codegen_flags: <defaults>
</compile_context>

<pallas_src>
import jax
import jax.numpy as jnp
from jax.experimental import pallas as pl
from jax.experimental.pallas import tpu as pltpu

BERT_DIM = 768        # bert-base-uncased hidden size (fixed by the module: Linear(768, E))
EMBEDDING_DIM = 32    # embedding_dim passed to TextEncoder.__init__
NUM_INNER_TOKENS = 3  # "col fab cat" -> 3 word tokens between [CLS]/[SEP]


def text_encoder_kernel(tok_ref, w_ref, b_ref, out_ref):
    """tok_ref: (3, tb, D) f32 inner-token features.
       w_ref:   (D, E)  f32 = fc.weight^T pre-scaled by 1/3 (mean folded in).
       b_ref:   (1, E)  f32 bias.
       out_ref: (tb, E) f32.
    """
    # Unrolled sum over the 3 inner tokens: leading-axis loads -> plain VALU adds,
    # no cross-sublane reduce.
    s = tok_ref[0] + tok_ref[1] + tok_ref[2]                       # (tb, D)
    # Linear(768, E): mean @ W^T + b  ==  sum @ (W^T / 3) + b   (scale folded into w_ref)
    out_ref[...] = (
        jnp.dot(s, w_ref[...], preferred_element_type=jnp.float32) + b_ref[...]
    )


def text_encoder_forward(inner_token_feats, fc_w_t, fc_b, *, tb=256):
    """inner_token_feats: (3, B, 768) f32 (token axis leading, [CLS]/[SEP] already dropped).
       fc_w_t: (768, E) f32 (already W^T); fc_b: (E,) f32.
       Returns (B, E) f32.
    """
    T, B, D = inner_token_feats.shape
    assert T == NUM_INNER_TOKENS, T
    E = fc_w_t.shape[1]

    # Fold the 1/T mean scale into the weight once at wrap time.
    w_scaled = (fc_w_t * (1.0 / float(T))).astype(jnp.float32)
    b2d = fc_b.reshape(1, E).astype(jnp.float32)

    # Batch tiling: single block for small B; sublane-aligned tiles + padding otherwise.
    tb_eff = min(tb, B)
    if tb_eff < B:
        tb_eff = max(8, (tb_eff // 8) * 8)          # keep tiles a multiple of 8 sublanes
    pad = (-B) % tb_eff
    if pad:
        inner_token_feats = jnp.pad(inner_token_feats, ((0, 0), (0, pad), (0, 0)))
    Bp = B + pad
    grid = (Bp // tb_eff,)

    out = pl.pallas_call(
        text_encoder_kernel,
        out_shape=jax.ShapeDtypeStruct((Bp, E), jnp.float32),
        grid=grid,
        in_specs=[
            pl.BlockSpec((T, tb_eff, D), lambda i: (0, i, 0)),
            pl.BlockSpec((D, E), lambda i: (0, 0)),
            pl.BlockSpec((1, E), lambda i: (0, 0)),
        ],
        out_specs=pl.BlockSpec((tb_eff, E), lambda i: (i, 0)),
        compiler_params=pltpu.CompilerParams(
            dimension_semantics=("parallel",),
        ),
    )(inner_token_feats, w_scaled, b2d)

    return out[:B] if pad else out


def synth_bert_inner_token_features(attrs, tables):
    """Glue (plain JAX): stand-in for the BERT feature-extraction pipeline.

    attrs: (B, 3) int32 [col_id, fab_id, cat_id]
    tables: list of 3 arrays (vocab_i, 768) — deterministic per-word features.
    Returns (3, B, 768): features of the inner tokens only ([CLS]/[SEP] are discarded
    by the module's `[1:-1]` slice, so they are never materialized or DMA'd).
    """
    # TODO(synk): real bert-base-uncased tokenization + transformer encoding is not
    # expressible as a Pallas kernel; token features are synthesized deterministically here.
    col = jnp.take(tables[0], attrs[:, 0], axis=0)   # (B, 768)
    fab = jnp.take(tables[1], attrs[:, 1], axis=0)
    cat = jnp.take(tables[2], attrs[:, 2], axis=0)
    return jnp.stack([col, fab, cat], axis=0).astype(jnp.float32)  # (3, B, 768)


def reference_forward(inner_token_feats, fc_w_t, fc_b):
    mean = inner_token_feats.mean(axis=0)            # (B, 768)  == x[0][1:-1].mean(axis=0)
    return mean @ fc_w_t + fc_b[None, :]


if __name__ == "__main__":
    key = jax.random.PRNGKey(0)
    k_col, k_fab, k_cat, k_w, k_b, k_attr = jax.random.split(key, 6)

    B = 4
    n_col, n_fab, n_cat = 6, 5, 7   # small synthetic attrs_dict vocab sizes

    # Deterministic "BERT-like" per-word feature tables.
    col_tab = jax.random.normal(k_col, (n_col, BERT_DIM), jnp.float32)
    fab_tab = jax.random.normal(k_fab, (n_fab, BERT_DIM), jnp.float32)
    cat_tab = jax.random.normal(k_cat, (n_cat, BERT_DIM), jnp.float32)

    # Linear(768, embedding_dim) parameters. Stored as W^T: (768, E).
    fc_w_t = jax.random.normal(k_w, (BERT_DIM, EMBEDDING_DIM), jnp.float32) * (BERT_DIM ** -0.5)
    fc_b = jax.random.normal(k_b, (EMBEDDING_DIM,), jnp.float32) * 0.01

    # attrs: (B, 3) integer ids [col_id, fab_id, cat_id]
    attrs = jnp.stack(
        [
            jax.random.randint(k_attr, (B,), 0, n_col),
            jax.random.randint(jax.random.fold_in(k_attr, 1), (B,), 0, n_fab),
            jax.random.randint(jax.random.fold_in(k_attr, 2), (B,), 0, n_cat),
        ],
        axis=1,
    ).astype(jnp.int32)

    inner_feats = synth_bert_inner_token_features(attrs, [col_tab, fab_tab, cat_tab])  # (3,B,768)

    out = text_encoder_forward(inner_feats, fc_w_t, fc_b)
    out = jax.block_until_ready(out)

    ref = reference_forward(inner_feats, fc_w_t, fc_b)
    assert out.shape == (B, EMBEDDING_DIM), out.shape
    assert jnp.allclose(out, ref, atol=1e-4, rtol=1e-4), float(jnp.max(jnp.abs(out - ref)))

    # NOTE: nn.Dropout(0.1) is defined in __init__ but never applied in forward(); omitted.
    print("KERNEL_OK")
</pallas_src>

<mosaic_0001>
module attributes {stable_mosaic.version = 11 : i64} {
  func.func @text_encoder_kernel(%arg0: i32, %arg1: memref<3x4x768xf32, #tpu.memory_space<vmem>>, %arg2: memref<768x32xf32, #tpu.memory_space<vmem>>, %arg3: memref<1x32xf32, #tpu.memory_space<vmem>>, %arg4: memref<4x32xf32, #tpu.memory_space<vmem>>) attributes {dimension_semantics = [#tpu.dimension_semantics<parallel>], iteration_bounds = array<i64: 1>, scalar_prefetch = 0 : i64, scratch_operands = 0 : i64, tpu.core_type = #tpu.core_type<tc>, window_params = [{transform_indices = @transform_0, window_bounds = array<i64: 3, 4, 768>}, {pipeline_mode = #tpu.pipeline_mode<synchronous>, transform_indices = @transform_1, window_bounds = array<i64: 768, 32>}, {pipeline_mode = #tpu.pipeline_mode<synchronous>, transform_indices = @transform_2, window_bounds = array<i64: 1, 32>}, {transform_indices = @transform_3, window_bounds = array<i64: 4, 32>}]} {
    %c0 = arith.constant 0 : index
    %c0_0 = arith.constant 0 : index
    %c0_1 = arith.constant 0 : index
    %0 = vector.load %arg1[%c0, %c0_0, %c0_1] : memref<3x4x768xf32, #tpu.memory_space<vmem>>, vector<1x4x768xf32>
    %1 = vector.shape_cast %0 : vector<1x4x768xf32> to vector<4x768xf32>
    %c1 = arith.constant 1 : index
    %c0_2 = arith.constant 0 : index
    %c0_3 = arith.constant 0 : index
    %2 = vector.load %arg1[%c1, %c0_2, %c0_3] : memref<3x4x768xf32, #tpu.memory_space<vmem>>, vector<1x4x768xf32>
    %3 = vector.shape_cast %2 : vector<1x4x768xf32> to vector<4x768xf32>
    %4 = arith.addf %1, %3 : vector<4x768xf32>
    %c2 = arith.constant 2 : index
    %c0_4 = arith.constant 0 : index
    %c0_5 = arith.constant 0 : index
    %5 = vector.load %arg1[%c2, %c0_4, %c0_5] : memref<3x4x768xf32, #tpu.memory_space<vmem>>, vector<1x4x768xf32>
    %6 = vector.shape_cast %5 : vector<1x4x768xf32> to vector<4x768xf32>
    %7 = arith.addf %4, %6 : vector<4x768xf32>
    %c0_6 = arith.constant 0 : index
    %c0_7 = arith.constant 0 : index
    %8 = vector.load %arg2[%c0_6, %c0_7] : memref<768x32xf32, #tpu.memory_space<vmem>>, vector<768x32xf32>
    %cst = arith.constant dense<0.000000e+00> : vector<4x32xf32>
    %9 = tpu.matmul %7, %8, %cst {dimension_numbers = #tpu.dot_dimension_numbers<[1], [0], [0], [1], [0, 0, 1, 1], [], []>} : vector<4x768xf32>, vector<768x32xf32>, vector<4x32xf32> -> vector<4x32xf32>
    %c0_8 = arith.constant 0 : index
    %c0_9 = arith.constant 0 : index
    %10 = vector.load %arg3[%c0_8, %c0_9] : memref<1x32xf32, #tpu.memory_space<vmem>>, vector<1x32xf32>
    %11 = vector.broadcast %10 : vector<1x32xf32> to vector<4x32xf32>
    %12 = arith.addf %9, %11 : vector<4x32xf32>
    %c0_10 = arith.constant 0 : index
    %c0_11 = arith.constant 0 : index
    %13 = vector.load %arg4[%c0_10, %c0_11] : memref<4x32xf32, #tpu.memory_space<vmem>>, vector<4x32xf32>
    tpu.vector_store %arg4[%c0_10, %c0_11], %12 {strides = array<i32>} : memref<4x32xf32, #tpu.memory_space<vmem>>, vector<4x32xf32>,
    return
  }
  func.func @transform_0(%arg0: i32) -> (i32, i32, i32) {
    %c0_i32 = arith.constant 0 : i32
    %c0_i32_0 = arith.constant 0 : i32
    %c0_i32_1 = arith.constant 0 : i32
    return %c0_i32, %arg0, %c0_i32_0 : i32, i32, i32
  }
  func.func @transform_1(%arg0: i32) -> (i32, i32) {
    %c0_i32 = arith.constant 0 : i32
    %c0_i32_0 = arith.constant 0 : i32
    %c0_i32_1 = arith.constant 0 : i32
    return %c0_i32, %c0_i32_0 : i32, i32
  }
  func.func @transform_2(%arg0: i32) -> (i32, i32) {
    %c0_i32 = arith.constant 0 : i32
    %c0_i32_0 = arith.constant 0 : i32
    %c0_i32_1 = arith.constant 0 : i32
    return %c0_i32, %c0_i32_0 : i32, i32
  }
  func.func @transform_3(%arg0: i32) -> (i32, i32) {
    %c0_i32 = arith.constant 0 : i32
    %c0_i32_0 = arith.constant 0 : i32
    return %arg0, %c0_i32 : i32, i32
  }
}

</mosaic_0001>

<bundles_post_ra>
// kernel: tpu_custom_call.1
= control target key start
LH: loop header
LB: loop body
LE: loop exit
PB: predicated region body
PF: predicated region fallthrough
CT: control target
= control target key end

     0   :  { %s666_s0 = inlined_call_operand.vmem [shape: f32[3,4,768], index: 0, kind: input, shape index: {}]   ;;  %s667_s1 = inlined_call_operand.vmem [shape: f32[768,32], index: 1, kind: input, shape index: {}]   ;;  %s668_s2 = inlined_call_operand.vmem [shape: f32[1,32], index: 2, kind: input, shape index: {}]   ;;  %s669_s3 = inlined_call_operand.hbm [shape: f32[4,32], index: 3, kind: output, shape index: {}]  }
   0x1   :  { %v47_v0 = vld [vmem:[%s667_s1 + $0x78] sm:$0xff]  ;;  %v46_v1 = vld [vmem:[%s667_s1 + $0x70] sm:$0xff]  ;;  %v45_v4 = vld [vmem:[%s667_s1 + $0x68] sm:$0xff] }
   0x2   :  { %v63_v2 = vld [vmem:[%s667_s1 + $0xf8] sm:$0xff]  ;;  %152 = vmatpush.msra.mxu0 %v47_v0  ;;  %v62_v3 = vld [vmem:[%s667_s1 + $0xf0] sm:$0xff]  ;;  %v61_v5 = vld [vmem:[%s667_s1 + $0xe8] sm:$0xff] }
   0x3   :  { %172 = vmatpush.msra.mxu1 %v63_v2  ;;  %v44_v6 = vld [vmem:[%s667_s1 + $0x60] sm:$0xff]  ;;  %v43_v8 = vld [vmem:[%s667_s1 + $0x58] sm:$0xff]  ;;  %v42_v10 = vld [vmem:[%s667_s1 + $0x50] sm:$0xff] }
   0x4   :  { %153 = vmatpush.msra.mxu0 %v46_v1  ;;  %v60_v7 = vld [vmem:[%s667_s1 + $0xe0] sm:$0xff]  ;;  %v59_v9 = vld [vmem:[%s667_s1 + $0xd8] sm:$0xff]  ;;  %v58_v12 = vld [vmem:[%s667_s1 + $0xd0] sm:$0xff] }
   0x5   :  { %173 = vmatpush.msra.mxu1 %v62_v3  ;;  %v79_v11 = vld [vmem:[%s667_s1 + $0x178] sm:$0xff]  ;;  %v78_v13 = vld [vmem:[%s667_s1 + $0x170] sm:$0xff]  ;;  %v77_v15 = vld [vmem:[%s667_s1 + $0x168] sm:$0xff] }
   0x6   :  { %154 = vmatpush.msra.mxu0 %v45_v4  ;;  %192 = vmatpush.msra.mxu2 %v79_v11  ;;  %v95_v14 = vld [vmem:[%s667_s1 + $0x1f8] sm:$0xff]  ;;  %v94_v16 = vld [vmem:[%s667_s1 + $0x1f0] sm:$0xff]  ;;  %v41_v17 = vld [vmem:[%s667_s1 + $0x48] sm:$0xff] }
   0x7   :  { %174 = vmatpush.msra.mxu1 %v61_v5  ;;  %v57_v18 = vld [vmem:[%s667_s1 + $0xc8] sm:$0xff]  ;;  %212 = vmatpush.msra.mxu3 %v95_v14  ;;  %v76_v19 = vld [vmem:[%s667_s1 + $0x160] sm:$0xff]  ;;  %v75_v23 = vld [vmem:[%s667_s1 + $0x158] sm:$0xff] }
   0x8   :  { %155 = vmatpush.msra.mxu0 %v44_v6  ;;  %193 = vmatpush.msra.mxu2 %v78_v13  ;;  %v93_v20 = vld [vmem:[%s667_s1 + $0x1e8] sm:$0xff]  ;;  %v40_v21 = vld [vmem:[%s667_s1 + $0x40] sm:$0xff]  ;;  %v39_v25 = vld [vmem:[%s667_s1 + $0x38] sm:$0xff] }
   0x9   :  { %175 = vmatpush.msra.mxu1 %v60_v7  ;;  %v56_v22 = vld [vmem:[%s667_s1 + $0xc0] sm:$0xff]  ;;  %213 = vmatpush.msra.mxu3 %v94_v16  ;;  %v55_v26 = vld [vmem:[%s667_s1 + $0xb8] sm:$0xff]  ;;  %v74_v27 = vld [vmem:[%s667_s1 + $0x150] sm:$0xff] }
   0xa   :  { %156 = vmatpush.msra.mxu0 %v43_v8  ;;  %194 = vmatpush.msra.mxu2 %v77_v15  ;;  %v92_v24 = vld [vmem:[%s667_s1 + $0x1e0] sm:$0xff]  ;;  %v91_v28 = vld [vmem:[%s667_s1 + $0x1d8] sm:$0xff]  ;;  %v38_v29 = vld [vmem:[%s667_s1 + $0x30] sm:$0xff] }
   0xb   :  { %176 = vmatpush.msra.mxu1 %v59_v9  ;;  %214 = vmatpush.msra.mxu3 %v93_v20  ;;  %v54_v30 = vld [vmem:[%s667_s1 + $0xb0] sm:$0xff]  ;;  %v73_v31 = vld [vmem:[%s667_s1 + $0x148] sm:$0xff]  ;;  %v72_v35 = vld [vmem:[%s667_s1 + $0x140] sm:$0xff] }
   0xc   :  { %157 = vmatpush.msra.mxu0 %v42_v10  ;;  %195 = vmatpush.msra.mxu2 %v76_v19  ;;  %v90_v32 = vld [vmem:[%s667_s1 + $0x1d0] sm:$0xff]  ;;  %v37_v33 = vld [vmem:[%s667_s1 + $0x28] sm:$0xff]  ;;  %v36_v37 = vld [vmem:[%s667_s1 + $0x20] sm:$0xff] }
   0xd   :  { %177 = vmatpush.msra.mxu1 %v58_v12  ;;  %215 = vmatpush.msra.mxu3 %v92_v24  ;;  %v53_v34 = vld [vmem:[%s667_s1 + $0xa8] sm:$0xff]  ;;  %v52_v38 = vld [vmem:[%s667_s1 + $0xa0] sm:$0xff]  ;;  %v71_v39 = vld [vmem:[%s667_s1 + $0x138] sm:$0xff] }
   0xe   :  { %158 = vmatpush.msra.mxu0 %v41_v17  ;;  %196 = vmatpush.msra.mxu2 %v75_v23  ;;  %v89_v36 = vld [vmem:[%s667_s1 + $0x1c8] sm:$0xff]  ;;  %v88_v40 = vld [vmem:[%s667_s1 + $0x1c0] sm:$0xff]  ;;  %v35_v41 = vld [vmem:[%s667_s1 + $0x18] sm:$0xff] }
   0xf   :  { %178 = vmatpush.msra.mxu1 %v57_v18  ;;  %216 = vmatpush.msra.mxu3 %v91_v28  ;;  %v51_v42 = vld [vmem:[%s667_s1 + $0x98] sm:$0xff]  ;;  %v70_v43 = vld [vmem:[%s667_s1 + $0x130] sm:$0xff]  ;;  %v69_v47 = vld [vmem:[%s667_s1 + $0x128] sm:$0xff] }
  0x10   :  { %159 = vmatpush.msra.mxu0 %v40_v21  ;;  %197 = vmatpush.msra.mxu2 %v74_v27  ;;  %v87_v44 = vld [vmem:[%s667_s1 + $0x1b8] sm:$0xff]  ;;  %v34_v45 = vld [vmem:[%s667_s1 + $0x10] sm:$0xff]  ;;  %v33_v49 = vld [vmem:[%s667_s1 + $0x8] sm:$0xff] }
  0x11   :  { %179 = vmatpush.msra.mxu1 %v56_v22  ;;  %217 = vmatpush.msra.mxu3 %v90_v32  ;;  %v50_v46 = vld [vmem:[%s667_s1 + $0x90] sm:$0xff]  ;;  %v32_v50 = vld [vmem:[%s667_s1] sm:$0xff]  ;;  %v49_v51 = vld [vmem:[%s667_s1 + $0x88] sm:$0xff] }
  0x12   :  { %160 = vmatpush.msra.mxu0 %v39_v25  ;;  %198 = vmatpush.msra.mxu2 %v73_v31  ;;  %v86_v48 = vld [vmem:[%s667_s1 + $0x1b0] sm:$0xff]  ;;  %v111_v52 = vld [vmem:[%s667_s1 + $0x278] sm:$0xff]  ;;  %v48_v53 = vld [vmem:[%s667_s1 + $0x80] sm:$0xff] }
  0x13   :  { %180 = vmatpush.msra.mxu1 %v55_v26  ;;  %218 = vmatpush.msra.mxu3 %v89_v36  ;;  %v68_v54 = vld [vmem:[%s667_s1 + $0x120] sm:$0xff]  ;;  %v85_v55 = vld [vmem:[%s667_s1 + $0x1a8] sm:$0xff]  ;;  %v294_v58 = vld [vmem:[%s666_s0 + $0x38] sm:$0xff] }
  0x14   :  { %161 = vmatpush.msra.mxu0 %v38_v29  ;;  %199 = vmatpush.msra.mxu2 %v72_v35  ;;  %v16_v56 = vld [vmem:[%s666_s0 + $0x8] sm:$0xff]  ;;  %v291_v57 = vld [vmem:[%s666_s0 + $0x20] sm:$0xff]  ;;  %v127_v59 = vld [vmem:[%s667_s1 + $0x2f8] sm:$0xff] }
  0x15   :  { %181 = vmatpush.msra.mxu1 %v54_v30  ;;  %219 = vmatpush.msra.mxu3 %v88_v40  ;;  %v67_v60 = vld [vmem:[%s667_s1 + $0x118] sm:$0xff]  ;;  %v84_v61 = vld [vmem:[%s667_s1 + $0x1a0] sm:$0xff]  ;;  %v23_v62 = vadd.f32 %v291_v57, %v16_v56  ;;  %v293_v1 = vld [vmem:[%s666_s0 + $0x30] sm:$0xff] }
  0x16   :  { %162 = vmatpush.msra.mxu0 %v37_v33  ;;  %200 = vmatpush.msra.mxu2 %v71_v39  ;;  %v15_v63 = vld [vmem:[%s666_s0] sm:$0xff]  ;;  %v290_v0 = vld [vmem:[%s666_s0 + $0x18] sm:$0xff]  ;;  %v110_v2 = vld [vmem:[%s667_s1 + $0x270] sm:$0xff] }
  0x17   :  { %182 = vmatpush.msra.mxu1 %v53_v34  ;;  %220 = vmatpush.msra.mxu3 %v87_v44  ;;  %v126_v3 = vld [vmem:[%s667_s1 + $0x2f0] sm:$0xff]  ;;  %v30_v4 = vadd.f32 %v294_v58, %v23_v62  ;;  %v22_v5 = vadd.f32 %v290_v0, %v15_v63  ;;  %v109_v6 = vld [vmem:[%s667_s1 + $0x268] sm:$0xff]  ;;  %v83_v8 = vld [vmem:[%s667_s1 + $0x198] sm:$0xff] }
  0x18   :  { %163 = vmatpush.msra.mxu0 %v36_v37  ;;  %201 = vmatpush.msra.mxu2 %v70_v43  ;;  %v66_v7 = vld [vmem:[%s667_s1 + $0x110] sm:$0xff]  ;;  %v125_v9 = vld [vmem:[%s667_s1 + $0x2e8] sm:$0xff]  ;;  %v295_v15 = vld [vmem:[%s666_s0 + $0x40] sm:$0xff] }
  0x19   :  { %183 = vmatpush.msra.mxu1 %v52_v38  ;;  %221 = vmatpush.msra.mxu3 %v86_v48  ;;  %v65_v10 = vld [vmem:[%s667_s1 + $0x108] sm:$0xff]  ;;  %137 = vst [vmem:[#allocation1 + $0x10] ss:$2 sm:$0xff] %v30_v4  ;;  %v29_v11 = vadd.f32 %v293_v1, %v22_v5  ;;  %v17_v12 = vld [vmem:[%s666_s0 + $0x10] sm:$0xff]  ;;  %v108_v16 = vld [vmem:[%s667_s1 + $0x260] sm:$0xff] }
  0x1a   :  { %164 = vmatpush.msra.mxu0 %v35_v41  ;;  %202 = vmatpush.msra.mxu2 %v69_v47  ;;  %v82_v13 = vld [vmem:[%s667_s1 + $0x190] sm:$0xff]  ;;  %v292_v14 = vld [vmem:[%s666_s0 + $0x28] sm:$0xff]  ;;  %v124_v17 = vld [vmem:[%s667_s1 + $0x2e0] sm:$0xff] }
  0x1b   :  { %184 = vmatpush.msra.mxu1 %v51_v42  ;;  %222 = vmatpush.msra.mxu3 %v85_v55  ;;  %135 = vst [vmem:[#allocation1] ss:$2 sm:$0xff] %v29_v11  ;;  %v24_v18 = vadd.f32 %v292_v14, %v17_v12  ;;  %v64_v19 = vld [vmem:[%s667_s1 + $0x100] sm:$0xff]  ;;  %v81_v20 = vld [vmem:[%s667_s1 + $0x188] sm:$0xff] }
  0x1c   :  { %165 = vmatpush.msra.mxu0 %v34_v45  ;;  %203 = vmatpush.msra.mxu2 %v68_v54 }
  0x1d   :  { %185 = vmatpush.msra.mxu1 %v50_v46  ;;  %223 = vmatpush.msra.mxu3 %v84_v61 }
  0x1e   :  { %166 = vmatpush.msra.mxu0 %v33_v49  ;;  %204 = vmatpush.msra.mxu2 %v67_v60 }
  0x1f   :  { %186 = vmatpush.msra.mxu1 %v49_v51  ;;  %224 = vmatpush.msra.mxu3 %v83_v8 }
  0x20   :  { %167 = vmatpush.msra.mxu0 %v32_v50  ;;  %205 = vmatpush.msra.mxu2 %v66_v7 }
  0x21   :  { %187 = vmatpush.msra.mxu1 %v48_v53 }
  0x22   :  { %232 = vmatpush.msrb.mxu0 %v111_v52 }
  0x23   :  { %252 = vmatpush.msrb.mxu1 %v127_v59 }
  0x24   :  { %233 = vmatpush.msrb.mxu0 %v110_v2 }
  0x25   :  { %253 = vmatpush.msrb.mxu1 %v126_v3 }
  0x26   :  { %234 = vmatpush.msrb.mxu0 %v109_v6 }
  0x27   :  { %254 = vmatpush.msrb.mxu1 %v125_v9 }
  0x28   :  { %8 = vsyncpa [#allocation3], 0  ;;  %v107_v21 = vld [vmem:[%s667_s1 + $0x258] sm:$0xff]  ;;  %206 = vmatpush.msra.mxu2 %v65_v10  ;;  %225 = vmatpush.msra.mxu3 %v82_v13  ;;  %v31_v23 = vadd.f32 %v295_v15, %v24_v18  ;;  %v80_v24 = vld [vmem:[%s667_s1 + $0x180] sm:$0xff]  ;;  %s281_s0 = sshll.u32 %s669_s3, 4  ;;  %vm272_vm0 = vcmask 257024   ;;  %s282_s0 = int_to_ptr.hbm [resolvable:$true] %s281_s0 }
  0x29   :  { %v123_v22 = vld [vmem:[%s667_s1 + $0x2d8] sm:$0xff]  ;;  %235 = vmatpush.msrb.mxu0 %v108_v16  ;;  %255 = vmatpush.msrb.mxu1 %v124_v17  ;;  %v106_v25 = vld [vmem:[%s667_s1 + $0x250] sm:$0xff]  ;;  %v105_v29 = vld [vmem:[%s667_s1 + $0x248] sm:$0xff] }
  0x2a   :  { %v122_v26 = vld [vmem:[%s667_s1 + $0x2d0] sm:$0xff]  ;;  %207 = vmatpush.msra.mxu2 %v64_v19  ;;  %226 = vmatpush.msra.mxu3 %v81_v20  ;;  %139 = vst [vmem:[#allocation1 + $0x20] ss:$2 sm:$0xff] %v31_v23  ;;  %v143_v28 = vld.sshfl [vmem:[#allocation1 + $0x18] sm:$0xff pattern:$0x75316420] }
  0x2b   :  { %236 = vmatpush.msrb.mxu0 %v107_v21  ;;  %256 = vmatpush.msrb.mxu1 %v123_v22  ;;  %v142_v27 = vld.sshfl [vmem:[#allocation1 + $0x10] sm:$0xff pattern:$0x75316420]  ;;  %v121_v30 = vld [vmem:[%s667_s1 + $0x2c8] sm:$0xff]  ;;  %v104_v33 = vld [vmem:[%s667_s1 + $0x240] sm:$0xff] }
  0x2c   :  { %208 = vmatmul.f32.vlgmr.msra.gmra.mxu2 %v142_v27  ;;  %227 = vmatpush.msra.mxu3 %v80_v24  ;;  %v140_v31 = vld.sshfl [vmem:[#allocation1] sm:$0xff pattern:$0x75316420]  ;;  %v141_v32 = vld.sshfl [vmem:[#allocation1 + $0x8] sm:$0xff pattern:$0x75316420] }
  0x2d   :  { %237 = vmatpush.msrb.mxu0 %v106_v25  ;;  %257 = vmatpush.msrb.mxu1 %v122_v26  ;;  %v120_v34 = vld [vmem:[%s667_s1 + $0x2c0] sm:$0xff]  ;;  %v103_v35 = vld [vmem:[%s667_s1 + $0x238] sm:$0xff]  ;;  %v102_v37 = vld [vmem:[%s667_s1 + $0x230] sm:$0xff] }
  0x2e   :  { %168 = vmatmul.f32.vlgmr.msra.gmra.mxu0 %v140_v31  ;;  %228 = vmatmul.f32.vlgmr.msra.gmra.mxu3 %v143_v28  ;;  %v119_v36 = vld [vmem:[%s667_s1 + $0x2b8] sm:$0xff]  ;;  %v118_v38 = vld [vmem:[%s667_s1 + $0x2b0] sm:$0xff]  ;;  %v101_v39 = vld [vmem:[%s667_s1 + $0x228] sm:$0xff] }
  0x2f   :  { %238 = vmatpush.msrb.mxu0 %v105_v29  ;;  %258 = vmatpush.msrb.mxu1 %v121_v30  ;;  %v117_v40 = vld [vmem:[%s667_s1 + $0x2a8] sm:$0xff]  ;;  %v100_v41 = vld [vmem:[%s667_s1 + $0x220] sm:$0xff]  ;;  %v99_v43 = vld [vmem:[%s667_s1 + $0x218] sm:$0xff] }
  0x30   :  { %188 = vmatmul.f32.vlgmr.msra.gmra.mxu1 %v141_v32  ;;  %v116_v42 = vld [vmem:[%s667_s1 + $0x2a0] sm:$0xff]  ;;  %v115_v44 = vld [vmem:[%s667_s1 + $0x298] sm:$0xff]  ;;  %v98_v45 = vld [vmem:[%s667_s1 + $0x210] sm:$0xff] }
  0x31   :  { %239 = vmatpush.msrb.mxu0 %v104_v33  ;;  %259 = vmatpush.msrb.mxu1 %v120_v34  ;;  %v114_v46 = vld [vmem:[%s667_s1 + $0x290] sm:$0xff]  ;;  %v97_v47 = vld [vmem:[%s667_s1 + $0x208] sm:$0xff]  ;;  %v96_v49 = vld [vmem:[%s667_s1 + $0x200] sm:$0xff] }
  0x32   :  { %v113_v48 = vld [vmem:[%s667_s1 + $0x288] sm:$0xff]  ;;  %v112_v50 = vld [vmem:[%s667_s1 + $0x280] sm:$0xff]  ;;  %s324_s1 = smov [#allocation2]  }
  0x33   :  { %240 = vmatpush.msrb.mxu0 %v103_v35  ;;  %260 = vmatpush.msrb.mxu1 %v119_v36  ;;  %v144_v51 = vld.sshfl [vmem:[#allocation1 + $0x20] sm:$0xff pattern:$0x75316420]  ;;  %v145_v52 = vld.sshfl [vmem:[#allocation1 + $0x28] sm:$0xff pattern:$0x75316420] }
  0x34   :  { %v297_v53 = vld [vmem:[%s668_s2] ss:$0 sm:$0xff]  ;;  %s279_s6 = sshll.u32 %s324_s1, 4  ;;  %s280_s6 = int_to_ptr.vmem [resolvable:$true] %s279_s6 }
  0x35   :  { %241 = vmatpush.msrb.mxu0 %v102_v37  ;;  %261 = vmatpush.msrb.mxu1 %v118_v38 }
  0x37   :  { %242 = vmatpush.msrb.mxu0 %v101_v39  ;;  %262 = vmatpush.msrb.mxu1 %v117_v40 }
  0x39   :  { %243 = vmatpush.msrb.mxu0 %v100_v41  ;;  %263 = vmatpush.msrb.mxu1 %v116_v42 }
  0x3b   :  { %244 = vmatpush.msrb.mxu0 %v99_v43  ;;  %264 = vmatpush.msrb.mxu1 %v115_v44 }
  0x3d   :  { %245 = vmatpush.msrb.mxu0 %v98_v45  ;;  %265 = vmatpush.msrb.mxu1 %v114_v46 }
  0x3f   :  { %246 = vmatpush.msrb.mxu0 %v97_v47  ;;  %266 = vmatpush.msrb.mxu1 %v113_v48 }
  0x41   :  { %247 = vmatpush.msrb.mxu0 %v96_v49  ;;  %267 = vmatpush.msrb.mxu1 %v112_v50 }
  0x42   :  { %248 = vmatmul.f32.vlgmr.msrb.gmra.mxu0 %v144_v51  ;;  %268 = vmatmul.f32.vlgmr.msrb.gmra.mxu1 %v145_v52 }
  0xab   :  { %v169_v54 = vpop.f32.mrf.mxu0 }
  0xac   :  { %v170_v55 = vadd.f32 %v297_v53, %v169_v54 }
  0xad   :  { %v189_v56 = vpop.f32.mrf.mxu1 }
  0xae   :  { %v190_v57 = vadd.f32 %v189_v56, %v170_v55 }
  0xaf   :  { %v209_v58 = vpop.f32.mrf.mxu2 }
  0xb0   :  { %v210_v59 = vadd.f32 %v209_v58, %v190_v57 }
  0xb1   :  { %v229_v60 = vpop.f32.mrf.mxu3 }
  0xb2   :  { %v230_v61 = vadd.f32 %v229_v60, %v210_v59 }
  0xbf   :  { %v249_v62 = vpop.f32.mrf.mxu0  ;;  %v269_v63 = vpop.f32.mrf.mxu1 }
  0xc0   :  { %v250_v0 = vadd.f32 %v249_v62, %v230_v61 }
  0xc2   :  { %v270_v1 = vadd.f32 %v269_v63, %v250_v0 }
  0xc4   :  { %273 = vst.msk [vmem:[#allocation2] sm:$0xf] %vm272_vm0, %v270_v1 }
  0xc5   :  { %284 = dma.vmem_to_hbm [thread:$0]  %s280_s6, 64, %s282_s0, [#allocation3]  }
  0xc6   :  { %322 = dma.done.wait [#allocation3], 64  }
  0xc7   :  { %323 = vsyncadd [#allocation3], 4294967232 }
  0xc8   :  { %289 = vsyncpa [#allocation3], 1 }

</bundles_post_ra>
